<compile_context>
chip_gen: v6e
topology: v6e:2x2x1
jax: 0.10.0
libtpu: 0.0.40
codegen_flags: <defaults>
</compile_context>

<pallas_src>
import functools

import jax
import jax.numpy as jnp
from jax import lax
from jax.experimental import pallas as pl
from jax.experimental.pallas import tpu as pltpu


def _round_up(x: int, m: int) -> int:
    return ((x + m - 1) // m) * m


def bbox_transform_kernel(mean_ref, std_ref, boxes_ref, deltas_ref, out_ref):
    # boxes_ref / deltas_ref / out_ref: (BR, 128) f32 tiles of the flattened,
    # coordinate-interleaved stream: lane l holds coordinate (l % 4) of a box,
    # i.e. each group of 4 lanes is [x1, y1, x2, y2] of one box.
    # mean_ref / std_ref: (4,) f32 in SMEM.
    b = boxes_ref[...]                       # (BR, 128)
    t = deltas_ref[...]                      # (BR, 128)

    lane = lax.broadcasted_iota(jnp.int32, (1, 128), 1)
    c4 = lane & 3                            # coordinate index per lane
    is_min = c4 < 2                          # lanes holding x1 / y1

    def per_lane(ref):                       # (4,) SMEM -> (1, 128) lane const
        return jnp.where(c4 == 0, ref[0],
               jnp.where(c4 == 1, ref[1],
               jnp.where(c4 == 2, ref[2], ref[3])))

    d = t * per_lane(std_ref) + per_lane(mean_ref)   # de-normalized deltas

    # Values two lanes away; within each 4-lane group these are the partner
    # coordinate (x1<->x2, y1<->y2) and the paired delta (dx<->dw, dy<->dh).
    # pltpu.roll follows jnp.roll: roll(x, s)[l] = x[l - s]  (mod 128).
    b_next = pltpu.roll(b, 126, axis=1)      # b[l + 2]
    b_prev = pltpu.roll(b, 2, axis=1)        # b[l - 2]
    d_next = pltpu.roll(d, 126, axis=1)
    d_prev = pltpu.roll(d, 2, axis=1)

    partner = jnp.where(is_min, b_next, b_prev)          # x2 on x1-lane, x1 on x2-lane
    size = jnp.where(is_min, partner - b, b - partner)   # w (or h) on every lane
    lo = jnp.where(is_min, b, partner)                   # x1 (or y1) on every lane
    ctr = lo + 0.5 * size                                # ctr_x / ctr_y

    d_ctr = jnp.where(is_min, d, d_prev)                 # dx / dy on every lane
    d_sz = jnp.where(is_min, d_next, d)                  # dw / dh on every lane

    pred_ctr = ctr + d_ctr * size
    pred_sz = jnp.exp(d_sz) * size                       # EUP
    sign = jnp.where(is_min, -0.5, 0.5)

    out_ref[...] = (pred_ctr + sign * pred_sz).astype(out_ref.dtype)


@functools.partial(jax.jit, static_argnames=("block_rows",))
def bbox_transform(boxes, deltas, mean=None, std=None, *, block_rows=4096):
    """boxes, deltas: (B, N, 4) -> pred_boxes (B, N, 4) float32."""
    if mean is None:
        mean = jnp.array([0.0, 0.0, 0.0, 0.0], jnp.float32)
    if std is None:
        std = jnp.array([0.1, 0.1, 0.2, 0.2], jnp.float32)

    B, N, four = boxes.shape
    assert four == 4, "last dim of boxes/deltas must be 4"
    L = B * N * 4

    # Natural-layout flat streams (contiguous reshape -> no data movement).
    boxes_f = boxes.astype(jnp.float32).reshape(-1)
    deltas_f = deltas.astype(jnp.float32).reshape(-1)

    # Pad (zeros) only up to a multiple of 8*128 so the slab is (rows, 128)
    # with rows a multiple of the sublane tile.  Zero padding is safe and is
    # sliced off afterwards; groups of 4 lanes are never split by padding.
    Lp = _round_up(L, 8 * 128)
    if Lp != L:
        boxes_f = jnp.pad(boxes_f, (0, Lp - L))
        deltas_f = jnp.pad(deltas_f, (0, Lp - L))
    rows = Lp // 128

    br = max(8, (min(int(block_rows), rows) // 8) * 8)   # multiple of 8, <= rows
    grid = (pl.cdiv(rows, br),)                          # ragged last block OK

    tile_spec = pl.BlockSpec((br, 128), lambda i: (i, 0))
    smem_spec = pl.BlockSpec(memory_space=pltpu.MemorySpace.SMEM)

    out2d = pl.pallas_call(
        bbox_transform_kernel,
        out_shape=jax.ShapeDtypeStruct((rows, 128), jnp.float32),
        grid=grid,
        in_specs=[smem_spec, smem_spec, tile_spec, tile_spec],
        out_specs=tile_spec,
        compiler_params=pltpu.CompilerParams(
            dimension_semantics=("parallel",),
            vmem_limit_bytes=32 * 1024 * 1024),
        cost_estimate=pl.CostEstimate(
            flops=20 * B * N,
            transcendentals=2 * B * N,
            bytes_accessed=3 * Lp * 4 + 32),
    )(mean.astype(jnp.float32), std.astype(jnp.float32),
      boxes_f.reshape(rows, 128), deltas_f.reshape(rows, 128))

    out_flat = out2d.reshape(-1)
    if Lp != L:
        out_flat = out_flat[:L]
    return out_flat.reshape(B, N, 4)


def reference_bbox_transform(boxes, deltas, mean=None, std=None):
    """Pure-JAX reference mirroring the PyTorch module."""
    if mean is None:
        mean = jnp.array([0.0, 0.0, 0.0, 0.0], jnp.float32)
    if std is None:
        std = jnp.array([0.1, 0.1, 0.2, 0.2], jnp.float32)

    widths = boxes[:, :, 2] - boxes[:, :, 0]
    heights = boxes[:, :, 3] - boxes[:, :, 1]
    ctr_x = boxes[:, :, 0] + 0.5 * widths
    ctr_y = boxes[:, :, 1] + 0.5 * heights

    dx = deltas[:, :, 0] * std[0] + mean[0]
    dy = deltas[:, :, 1] * std[1] + mean[1]
    dw = deltas[:, :, 2] * std[2] + mean[2]
    dh = deltas[:, :, 3] * std[3] + mean[3]

    pred_ctr_x = ctr_x + dx * widths
    pred_ctr_y = ctr_y + dy * heights
    pred_w = jnp.exp(dw) * widths
    pred_h = jnp.exp(dh) * heights

    return jnp.stack(
        [pred_ctr_x - 0.5 * pred_w,
         pred_ctr_y - 0.5 * pred_h,
         pred_ctr_x + 0.5 * pred_w,
         pred_ctr_y + 0.5 * pred_h], axis=2)


if __name__ == "__main__":
    # TODO(synk): the PyTorch module's `.cuda()` device move has no kernel
    # equivalent; JAX array placement handles devices outside the kernel.
    B, N = 2, 300  # small demo: 2 images x 300 anchors (exercises pad + grid)
    key = jax.random.PRNGKey(0)
    k1, k2, k3 = jax.random.split(key, 3)

    xy = jax.random.uniform(k1, (B, N, 2), minval=0.0, maxval=100.0)
    wh = jax.random.uniform(k2, (B, N, 2), minval=1.0, maxval=50.0)
    boxes = jnp.concatenate([xy, xy + wh], axis=-1).astype(jnp.float32)
    deltas = (0.5 * jax.random.normal(k3, (B, N, 4))).astype(jnp.float32)

    # 1) default (single big block) and 2) small blocks (multi-step pipeline).
    out_default = jax.block_until_ready(bbox_transform(boxes, deltas))
    out_tiled = jax.block_until_ready(bbox_transform(boxes, deltas, block_rows=8))
    ref = jax.block_until_ready(reference_bbox_transform(boxes, deltas))

    assert out_default.shape == (B, N, 4) and out_default.dtype == jnp.float32
    assert jnp.allclose(out_default, ref, rtol=1e-5, atol=1e-4), (
        f"max abs err {jnp.max(jnp.abs(out_default - ref))}")
    assert jnp.allclose(out_tiled, ref, rtol=1e-5, atol=1e-4), (
        f"max abs err {jnp.max(jnp.abs(out_tiled - ref))}")

    # 3) custom mean/std path (exercises the SMEM scalar broadcast).
    mean_c = jnp.array([0.05, -0.02, 0.01, 0.03], jnp.float32)
    std_c = jnp.array([0.2, 0.15, 0.25, 0.3], jnp.float32)
    out_c = jax.block_until_ready(bbox_transform(boxes, deltas, mean_c, std_c))
    ref_c = jax.block_until_ready(
        reference_bbox_transform(boxes, deltas, mean_c, std_c))
    assert jnp.allclose(out_c, ref_c, rtol=1e-5, atol=1e-4), (
        f"max abs err {jnp.max(jnp.abs(out_c - ref_c))}")

    print("KERNEL_OK")
</pallas_src>

<mosaic_0001>
module attributes {stable_mosaic.version = 11 : i64} {
  func.func @bbox_transform_kernel(%arg0: i32, %arg1: memref<4xf32, #tpu.memory_space<smem>>, %arg2: memref<4xf32, #tpu.memory_space<smem>>, %arg3: memref<24x128xf32, #tpu.memory_space<vmem>>, %arg4: memref<24x128xf32, #tpu.memory_space<vmem>>, %arg5: memref<24x128xf32, #tpu.memory_space<vmem>>) attributes {dimension_semantics = [#tpu.dimension_semantics<parallel>], iteration_bounds = array<i64: 1>, scalar_prefetch = 0 : i64, scratch_operands = 0 : i64, tpu.core_type = #tpu.core_type<tc>, window_params = [{transform_indices = @transform_0, window_bounds = array<i64: 4>}, {transform_indices = @transform_1, window_bounds = array<i64: 4>}, {transform_indices = @transform_2, window_bounds = array<i64: 24, 128>}, {transform_indices = @transform_3, window_bounds = array<i64: 24, 128>}, {transform_indices = @transform_4, window_bounds = array<i64: 24, 128>}]} {
    %c0 = arith.constant 0 : index
    %c0_0 = arith.constant 0 : index
    %0 = vector.load %arg3[%c0, %c0_0] : memref<24x128xf32, #tpu.memory_space<vmem>>, vector<24x128xf32>
    %c0_1 = arith.constant 0 : index
    %c0_2 = arith.constant 0 : index
    %1 = vector.load %arg4[%c0_1, %c0_2] : memref<24x128xf32, #tpu.memory_space<vmem>>, vector<24x128xf32>
    %2 = tpu.iota {dimensions = array<i32: 1>} : vector<1x128xi32>
    %c3_i32 = arith.constant 3 : i32
    %3 = vector.broadcast %c3_i32 : i32 to vector<1x128xi32>
    %4 = arith.andi %2, %3 : vector<1x128xi32>
    %c2_i32 = arith.constant 2 : i32
    %5 = vector.broadcast %c2_i32 : i32 to vector<1x128xi32>
    %6 = arith.cmpi slt, %4, %5 : vector<1x128xi32>
    %c0_i32 = arith.constant 0 : i32
    %7 = vector.broadcast %c0_i32 : i32 to vector<1x128xi32>
    %8 = arith.cmpi eq, %4, %7 : vector<1x128xi32>
    %c0_3 = arith.constant 0 : index
    %9 = memref.load %arg2[%c0_3] : memref<4xf32, #tpu.memory_space<smem>>
    %c1_i32 = arith.constant 1 : i32
    %10 = vector.broadcast %c1_i32 : i32 to vector<1x128xi32>
    %11 = arith.cmpi eq, %4, %10 : vector<1x128xi32>
    %c1 = arith.constant 1 : index
    %12 = memref.load %arg2[%c1] : memref<4xf32, #tpu.memory_space<smem>>
    %c2_i32_4 = arith.constant 2 : i32
    %13 = vector.broadcast %c2_i32_4 : i32 to vector<1x128xi32>
    %14 = arith.cmpi eq, %4, %13 : vector<1x128xi32>
    %c2 = arith.constant 2 : index
    %15 = memref.load %arg2[%c2] : memref<4xf32, #tpu.memory_space<smem>>
    %c3 = arith.constant 3 : index
    %16 = memref.load %arg2[%c3] : memref<4xf32, #tpu.memory_space<smem>>
    %17 = vector.broadcast %15 : f32 to vector<1x128xf32>
    %18 = vector.broadcast %16 : f32 to vector<1x128xf32>
    %19 = arith.select %14, %17, %18 : vector<1x128xi1>, vector<1x128xf32>
    %20 = vector.broadcast %12 : f32 to vector<1x128xf32>
    %21 = arith.select %11, %20, %19 : vector<1x128xi1>, vector<1x128xf32>
    %22 = vector.broadcast %9 : f32 to vector<1x128xf32>
    %23 = arith.select %8, %22, %21 : vector<1x128xi1>, vector<1x128xf32>
    %24 = vector.broadcast %23 : vector<1x128xf32> to vector<24x128xf32>
    %25 = arith.mulf %1, %24 : vector<24x128xf32>
    %c0_i32_5 = arith.constant 0 : i32
    %26 = vector.broadcast %c0_i32_5 : i32 to vector<1x128xi32>
    %27 = arith.cmpi eq, %4, %26 : vector<1x128xi32>
    %c0_6 = arith.constant 0 : index
    %28 = memref.load %arg1[%c0_6] : memref<4xf32, #tpu.memory_space<smem>>
    %c1_i32_7 = arith.constant 1 : i32
    %29 = vector.broadcast %c1_i32_7 : i32 to vector<1x128xi32>
    %30 = arith.cmpi eq, %4, %29 : vector<1x128xi32>
    %c1_8 = arith.constant 1 : index
    %31 = memref.load %arg1[%c1_8] : memref<4xf32, #tpu.memory_space<smem>>
    %c2_i32_9 = arith.constant 2 : i32
    %32 = vector.broadcast %c2_i32_9 : i32 to vector<1x128xi32>
    %33 = arith.cmpi eq, %4, %32 : vector<1x128xi32>
    %c2_10 = arith.constant 2 : index
    %34 = memref.load %arg1[%c2_10] : memref<4xf32, #tpu.memory_space<smem>>
    %c3_11 = arith.constant 3 : index
    %35 = memref.load %arg1[%c3_11] : memref<4xf32, #tpu.memory_space<smem>>
    %36 = vector.broadcast %34 : f32 to vector<1x128xf32>
    %37 = vector.broadcast %35 : f32 to vector<1x128xf32>
    %38 = arith.select %33, %36, %37 : vector<1x128xi1>, vector<1x128xf32>
    %39 = vector.broadcast %31 : f32 to vector<1x128xf32>
    %40 = arith.select %30, %39, %38 : vector<1x128xi1>, vector<1x128xf32>
    %41 = vector.broadcast %28 : f32 to vector<1x128xf32>
    %42 = arith.select %27, %41, %40 : vector<1x128xi1>, vector<1x128xf32>
    %43 = vector.broadcast %42 : vector<1x128xf32> to vector<24x128xf32>
    %44 = arith.addf %25, %43 : vector<24x128xf32>
    %c126_i32 = arith.constant 126 : i32
    %45 = tpu.dynamic_rotate %0 by %c126_i32 dim 1 : vector<24x128xf32>, i32 -> vector<24x128xf32>
    %c2_i32_12 = arith.constant 2 : i32
    %46 = tpu.dynamic_rotate %0 by %c2_i32_12 dim 1 : vector<24x128xf32>, i32 -> vector<24x128xf32>
    %c126_i32_13 = arith.constant 126 : i32
    %47 = tpu.dynamic_rotate %44 by %c126_i32_13 dim 1 : vector<24x128xf32>, i32 -> vector<24x128xf32>
    %c2_i32_14 = arith.constant 2 : i32
    %48 = tpu.dynamic_rotate %44 by %c2_i32_14 dim 1 : vector<24x128xf32>, i32 -> vector<24x128xf32>
    %49 = vector.shape_cast %6 : vector<1x128xi1> to vector<1x128xi1>
    %50 = vector.broadcast %49 : vector<1x128xi1> to vector<24x128xi1>
    %51 = arith.select %50, %45, %46 : vector<24x128xi1>, vector<24x128xf32>
    %52 = arith.subf %51, %0 : vector<24x128xf32>
    %53 = arith.subf %0, %51 : vector<24x128xf32>
    %54 = vector.shape_cast %6 : vector<1x128xi1> to vector<1x128xi1>
    %55 = vector.broadcast %54 : vector<1x128xi1> to vector<24x128xi1>
    %56 = arith.select %55, %52, %53 : vector<24x128xi1>, vector<24x128xf32>
    %57 = vector.shape_cast %6 : vector<1x128xi1> to vector<1x128xi1>
    %58 = vector.broadcast %57 : vector<1x128xi1> to vector<24x128xi1>
    %59 = arith.select %58, %0, %51 : vector<24x128xi1>, vector<24x128xf32>
    %cst = arith.constant 5.000000e-01 : f32
    %60 = vector.broadcast %cst : f32 to vector<24x128xf32>
    %61 = arith.mulf %60, %56 : vector<24x128xf32>
    %62 = arith.addf %59, %61 : vector<24x128xf32>
    %63 = vector.shape_cast %6 : vector<1x128xi1> to vector<1x128xi1>
    %64 = vector.broadcast %63 : vector<1x128xi1> to vector<24x128xi1>
    %65 = arith.select %64, %44, %48 : vector<24x128xi1>, vector<24x128xf32>
    %66 = vector.shape_cast %6 : vector<1x128xi1> to vector<1x128xi1>
    %67 = vector.broadcast %66 : vector<1x128xi1> to vector<24x128xi1>
    %68 = arith.select %67, %47, %44 : vector<24x128xi1>, vector<24x128xf32>
    %69 = arith.mulf %65, %56 : vector<24x128xf32>
    %70 = arith.addf %62, %69 : vector<24x128xf32>
    %71 = math.exp %68 : vector<24x128xf32>
    %72 = arith.mulf %71, %56 : vector<24x128xf32>
    %cst_15 = arith.constant -5.000000e-01 : f32
    %cst_16 = arith.constant 5.000000e-01 : f32
    %73 = vector.broadcast %cst_15 : f32 to vector<1x128xf32>
    %74 = vector.broadcast %cst_16 : f32 to vector<1x128xf32>
    %75 = arith.select %6, %73, %74 : vector<1x128xi1>, vector<1x128xf32>
    %76 = vector.broadcast %75 : vector<1x128xf32> to vector<24x128xf32>
    %77 = arith.mulf %76, %72 : vector<24x128xf32>
    %78 = arith.addf %70, %77 : vector<24x128xf32>
    %c0_17 = arith.constant 0 : index
    %c0_18 = arith.constant 0 : index
    %79 = vector.load %arg5[%c0_17, %c0_18] : memref<24x128xf32, #tpu.memory_space<vmem>>, vector<24x128xf32>
    tpu.vector_store %arg5[%c0_17, %c0_18], %78 {strides = array<i32>} : memref<24x128xf32, #tpu.memory_space<vmem>>, vector<24x128xf32>,
    return
  }
  func.func @transform_0(%arg0: i32) -> i32 {
    %c0_i32 = arith.constant 0 : i32
    %c0_i32_0 = arith.constant 0 : i32
    return %c0_i32 : i32
  }
  func.func @transform_1(%arg0: i32) -> i32 {
    %c0_i32 = arith.constant 0 : i32
    %c0_i32_0 = arith.constant 0 : i32
    return %c0_i32 : i32
  }
  func.func @transform_2(%arg0: i32) -> (i32, i32) {
    %c0_i32 = arith.constant 0 : i32
    %c0_i32_0 = arith.constant 0 : i32
    return %arg0, %c0_i32 : i32, i32
  }
  func.func @transform_3(%arg0: i32) -> (i32, i32) {
    %c0_i32 = arith.constant 0 : i32
    %c0_i32_0 = arith.constant 0 : i32
    return %arg0, %c0_i32 : i32, i32
  }
  func.func @transform_4(%arg0: i32) -> (i32, i32) {
    %c0_i32 = arith.constant 0 : i32
    %c0_i32_0 = arith.constant 0 : i32
    return %arg0, %c0_i32 : i32, i32
  }
}

</mosaic_0001>

<bundles_post_ra>
// kernel: bbox_transform.1
= control target key start
LH: loop header
LB: loop body
LE: loop exit
PB: predicated region body
PF: predicated region fallthrough
CT: control target
= control target key end

     0   :  { %9 = vsyncpa [#allocation3], 0  ;;  %s357_s0 = inlined_call_operand.vmem [shape: f32[4], index: 0, kind: input, shape index: {}]   ;;  %s358_s1 = inlined_call_operand.vmem [shape: f32[4], index: 1, kind: input, shape index: {}]   ;;  %s359_s2 = inlined_call_operand.vmem [shape: f32[24,128], index: 2, kind: input, shape index: {}]   ;;  %s360_s3 = inlined_call_operand.vmem [shape: f32[24,128], index: 3, kind: input, shape index: {}]   ;;  %s361_s4 = inlined_call_operand.vmem [shape: f32[24,128], index: 4, kind: output, shape index: {}]  }
   0x1   :  { %s17_s17 = sshll.u32 %s357_s0, 4  ;;  %s18_s17 = int_to_ptr.vmem [resolvable:$true] %s17_s17 }
   0x2   :  { %10 = vsyncpa [#allocation5], 0  ;;  %s27_s20 = sshll.u32 %s358_s1, 4  ;;  %s184_s21 = scalar_lea.vmem %s18_s17, 16  ;;  %s28_s20 = int_to_ptr.vmem [resolvable:$true] %s27_s20 }
   0x3   :  { %p185_p0 = scmp.ne.s32.totalorder %s18_s17, %s184_s21  ;;  %p189_p1 = scmp.lt.s32.totalorder %s18_s17, %s18_s17 }
   0x4   :  { %p190_p2 = scmp.lt.s32.totalorder %s184_s21, %s184_s21 }
   0x6   :  { %p191_p3 = por %p190_p2, %p189_p1 }
   0x8   :  { %p192_p4 = pnand %p191_p3, %p185_p0 }
   0xa   :  { %195 = shalt.err (!%p192_p4)
}
   0xb   :  { %s212_s22 = smov [#allocation2]   ;;  %s196_s23 = scalar_lea.vmem %s28_s20, 16 }
   0xc   :  { %20 = dma.vmem_to_smem %s18_s17, 16, %s212_s22, [#allocation3]  }
   0xd   :  { %p197_p5 = scmp.ne.s32.totalorder %s28_s20, %s196_s23  ;;  %p201_p6 = scmp.lt.s32.totalorder %s28_s20, %s28_s20 }
   0xe   :  { %p202_p7 = scmp.lt.s32.totalorder %s196_s23, %s196_s23 }
  0x10   :  { %p203_p8 = por %p202_p7, %p201_p6 }
  0x12   :  { %p204_p9 = pnand %p203_p8, %p197_p5 }
  0x14   :  { %207 = shalt.err (!%p204_p9)
}
  0x15   :  { %s213_s0 = smov [#allocation4]  }
  0x16   :  { %30 = dma.vmem_to_smem %s28_s20, 16, %s213_s0, [#allocation5]  }
  0x17   :  { %208 = dma.done.wait [#allocation3], 16  }
  0x18   :  { %209 = vsyncadd [#allocation3], 4294967280 }
  0x19   :  { %210 = dma.done.wait [#allocation5], 16  }
  0x1a   :  { %211 = vsyncadd [#allocation5], 4294967280 }
  0x1b   :  { %41 = sfence }
  0x1c   :  { %v251_v0 = vld [vmem:[%s359_s2] sm:$0xff]  ;;  %v48_v1 = vlaneseq  ;;  %s53_s25 = sld [smem:[#allocation4]]  ;;  %s214_s26 = smov 126   ;;  %v47_v10 = vld [vmem:[%s360_s3 + $0x10] sm:$0xff]  ;;  %v46_v15 = vld [vmem:[%s360_s3 + $0x8] sm:$0xff]  ;;  %v216_v57 = vmov 0.5  }
  0x1d   :  { %83 = vrot.lane.b32.xlu1 %v251_v0, %s214_s26  ;;  %s167_s27 = sld [smem:[#allocation4 + $0x1]]  ;;  %v45_v8 = vld [vmem:[%s360_s3] sm:$0xff]  ;;  %v291_v27 = vld [vmem:[%s359_s2 + $0x10] sm:$0xff]  ;;  %v43_v28 = vld [vmem:[%s359_s2 + $0x8] sm:$0xff]  ;;  %s215_s17 = smov 2  }
  0x1e   :  { %v49_v2 = vand.u32 127, %v48_v1  ;;  %s168_s28 = sld [smem:[#allocation4 + $0x2]] }
  0x1f   :  { %s169_s29 = sld [smem:[#allocation4 + $0x3]] }
  0x20   :  { %v255_v3 = vand.u32 3, %v49_v2  ;;  %s69_s30 = sld [smem:[#allocation2]] }
  0x21   :  { %s170_s5 = sld [smem:[#allocation2 + $0x1]] }
  0x22   :  { %s171_s6 = sld [smem:[#allocation2 + $0x2]]  ;;  %vm56_vm0 = vcmp.eq.s32.totalorder %v255_v3, 2  ;;  %vm54_vm1 = vcmp.eq.s32.totalorder %v255_v3, 1  ;;  %vm52_vm2 = vcmp.eq.s32.totalorder %v255_v3, 0  ;;  %v64_v7 = vstv %s53_s25 }
  0x23   :  { %s172_s7 = sld [smem:[#allocation2 + $0x3]]  ;;  %v62_v5 = vstv %s167_s27  ;;  %vm51_vm3 = vcmp.lt.s32.totalorder %v255_v3, 2 }
  0x24   :  { %v59_v4 = vstv %s168_s28  ;;  %v151_v58 = vsel %vm51_vm3, -0.5, %v216_v57 }
  0x25   :  { %v60_v6 = vstv %s169_s29 }
  0x26   :  { %v61_v9 = vsel %vm56_vm0, %v59_v4, %v60_v6  ;;  %v78_v18 = vstv %s69_s30 }
  0x27   :  { %v63_v11 = vsel %vm54_vm1, %v62_v5, %v61_v9  ;;  %v76_v14 = vstv %s170_s5 }
  0x28   :  { %v65_v12 = vsel %vm52_vm2, %v64_v7, %v63_v11  ;;  %v73_v13 = vstv %s171_s6 }
  0x29   :  { %v66_v16 = vmul.f32 %v65_v12, %v45_v8  ;;  %v74_v17 = vstv %s172_s7  ;;  %v68_v19 = vmul.f32 %v65_v12, %v47_v10  ;;  %v67_v22 = vmul.f32 %v65_v12, %v46_v15 }
  0x2a   :  { %v75_v20 = vsel %vm56_vm0, %v73_v13, %v74_v17 }
  0x2b   :  { %v77_v21 = vsel %vm54_vm1, %v76_v14, %v75_v20 }
  0x2c   :  { %v79_v23 = vsel %vm52_vm2, %v78_v18, %v77_v21 }
  0x2d   :  { %v80_v24 = vadd.f32 %v79_v23, %v66_v16  ;;  %v281_v25 = vadd.f32 %v79_v23, %v68_v19  ;;  %v286_v26 = vadd.f32 %v79_v23, %v67_v22 }
  0x2f   :  { %95 = vrot.lane.b32.xlu0 %v80_v24, %s214_s26  ;;  %99 = vrot.lane.b32.xlu1 %v281_v25, %s214_s26 }
  0x33   :  { %97 = vrot.lane.b32.xlu0 %v286_v26, %s214_s26  ;;  %87 = vrot.lane.b32.xlu1 %v291_v27, %s214_s26 }
  0x37   :  { %85 = vrot.lane.b32.xlu0 %v43_v28, %s214_s26  ;;  %91 = vrot.lane.b32.xlu1 %v43_v28, %s215_s17 }
  0x3b   :  { %89 = vrot.lane.b32.xlu0 %v251_v0, %s215_s17  ;;  %101 = vrot.lane.b32.xlu1 %v80_v24, %s215_s17 }
  0x3f   :  { %93 = vrot.lane.b32.xlu0 %v291_v27, %s215_s17  ;;  %105 = vrot.lane.b32.xlu1 %v281_v25, %s215_s17 }
  0x43   :  { %103 = vrot.lane.b32.xlu0 %v286_v26, %s215_s17 }
  0x8f   :  { %v84_v29 = vpop.permute.xlu1 %83 }
  0xa1   :  { %v96_v30 = vpop.permute.xlu0 %95  ;;  %v100_v31 = vpop.permute.xlu1 %99 }
  0xa2   :  { %v133_v32 = vsel %vm51_vm3, %v96_v30, %v80_v24  ;;  %v135_v33 = vsel %vm51_vm3, %v100_v31, %v281_v25 }
  0xa3   :  { %v142_v34 = vmul.f32 1.442695, %v133_v32  ;;  %v146_v35 = vmul.f32 1.442695, %v135_v33 }
  0xa5   :  { %178 = vpow2.f32 %v142_v34  ;;  %v98_v36 = vpop.permute.xlu0 %97  ;;  %v88_v37 = vpop.permute.xlu1 %87 }
  0xa6   :  { %180 = vpow2.f32 %v146_v35  ;;  %v134_v38 = vsel %vm51_vm3, %v98_v36, %v286_v26 }
  0xa7   :  { %v144_v39 = vmul.f32 1.442695, %v134_v38 }
  0xa9   :  { %182 = vpow2.f32 %v144_v39  ;;  %v86_v40 = vpop.permute.xlu0 %85  ;;  %v92_v41 = vpop.permute.xlu1 %91 }
  0xaa   :  { %v110_v42 = vsel %vm51_vm3, %v86_v40, %v92_v41  ;;  %v122_v4 = vsel %vm51_vm3, %v43_v28, %v92_v41 }
  0xab   :  { %v113_v43 = vsub.f32 %v110_v42, %v43_v28  ;;  %v116_v44 = vsub.f32 %v43_v28, %v110_v42 }
  0xad   :  { %v90_v45 = vpop.permute.xlu0 %89  ;;  %v102_v46 = vpop.permute.xlu1 %101  ;;  %v119_v48 = vsel %vm51_vm3, %v113_v43, %v116_v44 }
  0xae   :  { %v109_v47 = vsel %vm51_vm3, %v84_v29, %v90_v45  ;;  %v130_v52 = vsel %vm51_vm3, %v80_v24, %v102_v46  ;;  %v125_v55 = vmul.f32 0.5, %v119_v48  ;;  %v121_v62 = vsel %vm51_vm3, %v251_v0, %v90_v45 }
  0xaf   :  { %v112_v49 = vsub.f32 %v109_v47, %v251_v0  ;;  %v115_v50 = vsub.f32 %v251_v0, %v109_v47 }
  0xb0   :  { %v128_v14 = vadd.f32 %v125_v55, %v122_v4 }
  0xb1   :  { %v118_v51 = vsel %vm51_vm3, %v112_v49, %v115_v50  ;;  %v94_v53 = vpop.permute.xlu0 %93  ;;  %v106_v60 = vpop.permute.xlu1 %105 }
  0xb2   :  { %v179_v54 = vpop.eup %178  ;;  %v124_v56 = vmul.f32 0.5, %v118_v51  ;;  %v111_v59 = vsel %vm51_vm3, %v88_v37, %v94_v53  ;;  %v136_v6 = vmul.f32 %v130_v52, %v118_v51  ;;  %v132_v9 = vsel %vm51_vm3, %v281_v25, %v106_v60 }
  0xb3   :  { %v181_v61 = vpop.eup %180  ;;  %v148_v63 = vmul.f32 %v179_v54, %v118_v51  ;;  %v114_v1 = vsub.f32 %v111_v59, %v291_v27  ;;  %v117_v2 = vsub.f32 %v291_v27, %v111_v59  ;;  %v123_v16 = vsel %vm51_vm3, %v291_v27, %v94_v53 }
  0xb4   :  { %v127_v5 = vadd.f32 %v124_v56, %v121_v62 }
  0xb5   :  { %v152_v7 = vmul.f32 %v151_v58, %v148_v63  ;;  %v120_v8 = vsel %vm51_vm3, %v114_v1, %v117_v2  ;;  %v104_v10 = vpop.permute.xlu0 %103 }
  0xb6   :  { %v183_v0 = vpop.eup %182  ;;  %v139_v11 = vadd.f32 %v136_v6, %v127_v5  ;;  %v126_v12 = vmul.f32 0.5, %v120_v8  ;;  %v150_v13 = vmul.f32 %v181_v61, %v120_v8  ;;  %v131_v17 = vsel %vm51_vm3, %v286_v26, %v104_v10 }
  0xb7   :  { %v149_v15 = vmul.f32 %v183_v0, %v119_v48  ;;  %v138_v20 = vmul.f32 %v132_v9, %v120_v8  ;;  %v137_v21 = vmul.f32 %v131_v17, %v119_v48 }
  0xb8   :  { %v155_v18 = vadd.f32 %v152_v7, %v139_v11  ;;  %v129_v19 = vadd.f32 %v126_v12, %v123_v16  ;;  %v154_v23 = vmul.f32 %v151_v58, %v150_v13 }
  0xb9   :  { %v153_v22 = vmul.f32 %v151_v58, %v149_v15  ;;  %v140_v25 = vadd.f32 %v137_v21, %v128_v14 }
  0xba   :  { %158 = vst [vmem:[%s361_s4] sm:$0xff] %v155_v18  ;;  %v141_v24 = vadd.f32 %v138_v20, %v129_v19 }
  0xbb   :  { %v156_v29 = vadd.f32 %v153_v22, %v140_v25 }
  0xbc   :  { %v157_v28 = vadd.f32 %v154_v23, %v141_v24 }
  0xbd   :  { %159 = vst [vmem:[%s361_s4 + $0x8] sm:$0xff] %v156_v29 }
  0xbe   :  { %160 = vst [vmem:[%s361_s4 + $0x10] sm:$0xff] %v157_v28 }
  0xbf   :  { %165 = vsyncpa [#allocation3], 1 }
  0xc0   :  { %166 = vsyncpa [#allocation5], 1 }

</bundles_post_ra>
